<compile_context>
chip_gen: v5e
topology: v5e:2x2
jax: 0.10.0
libtpu: 0.0.40
codegen_flags: <defaults>
</compile_context>

<pallas_src>
import functools

import jax
import jax.numpy as jnp
from jax.experimental import pallas as pl
from jax.experimental.pallas import tpu as pltpu

HALF = 64  # mu occupies lanes [0, HALF), sigma lanes [HALF, 2*HALF) of the head


def vae_kernel(x_ref, eps_ref, w1_ref, b1_ref, wh_ref, bh_ref,
               w2_ref, b2_ref, w3_ref, b3_ref,
               xrec_ref, musig_ref, *, half):
    mxu_dt = w1_ref.dtype
    f32 = jnp.float32

    # encode: h = relu(x @ W1 + b1)   (x cast to bf16 in-kernel, f32 accumulate)
    h = jnp.dot(x_ref[...].astype(mxu_dt), w1_ref[...], preferred_element_type=f32)
    h = jnp.maximum(h + b1_ref[...], 0.0)

    # fused mu|sigma head: one lane-dense 128-lane slab
    #   lanes [0, half)      -> mu   (zero-padded past z_dim)
    #   lanes [half, 2*half) -> sigma (zero-padded past z_dim)
    musig = jnp.dot(h.astype(mxu_dt), wh_ref[...],
                    preferred_element_type=f32) + bh_ref[...]
    mu = musig[:, :half]
    sigma = musig[:, half:]

    # reparameterization: z = mu + sigma * eps  (padded lanes are exactly zero)
    z = mu + sigma * eps_ref[...].astype(f32)

    # decode: h2 = relu(z @ W2 + b2); x_rec = sigmoid(h2 @ W3 + b3)
    h2 = jnp.dot(z.astype(mxu_dt), w2_ref[...], preferred_element_type=f32)
    h2 = jnp.maximum(h2 + b2_ref[...], 0.0)
    logits = jnp.dot(h2.astype(mxu_dt), w3_ref[...],
                     preferred_element_type=f32) + b3_ref[...]

    # sigmoid via tanh: a single transcendental per element (EUP), no divide.
    xrec_ref[...] = (0.5 * jnp.tanh(0.5 * logits) + 0.5).astype(xrec_ref.dtype)
    musig_ref[...] = musig


def pack_params(params, z_dim, param_dtype):
    """Fuse hid2mu / hid2sigma into one 128-lane head, pad z2hid to HALF input
    rows (zeros), cast matmul weights to `param_dtype` (biases stay f32)."""
    f32 = jnp.float32
    hidden = params["w1"].shape[1]

    w_head = jnp.zeros((hidden, 2 * HALF), f32)
    w_head = w_head.at[:, :z_dim].set(params["w_mu"])
    w_head = w_head.at[:, HALF:HALF + z_dim].set(params["w_sigma"])
    b_head = jnp.zeros((1, 2 * HALF), f32)
    b_head = b_head.at[:, :z_dim].set(params["b_mu"][0])
    b_head = b_head.at[:, HALF:HALF + z_dim].set(params["b_sigma"][0])

    w2 = jnp.zeros((HALF, hidden), f32).at[:z_dim, :].set(params["w2"])

    return dict(
        w1=params["w1"].astype(param_dtype), b1=params["b1"].astype(f32),
        w_head=w_head.astype(param_dtype), b_head=b_head,
        w2=w2.astype(param_dtype), b2=params["b2"].astype(f32),
        w3=params["w3"].astype(param_dtype), b3=params["b3"].astype(f32),
    )


def _pick_block_b(batch, *, num_tensorcores=2):
    """Batch-tile policy for an HBM-bound kernel: fatter tiles amortize the
    ~0.35us/step grid overhead; keep one tile per TensorCore (default 2 so
    v7x's two cores both get work; pass num_tensorcores=1 on v5e/v6e to run
    moderate batches as a single fat step); cap at 512 rows (~2 MB/step)."""
    ceil8 = lambda n: -(-n // 8) * 8
    b8 = ceil8(batch)
    if b8 <= 256:
        return b8                       # tiny batch: one sublane-aligned step
    per_core = ceil8(-(-b8 // num_tensorcores))
    return min(per_core, 512)


def vae_forward(x, params, eps, *, block_b=None, num_tensorcores=2,
                param_dtype=jnp.bfloat16):
    """x: [B, input_dim] f32; eps: [B, z_dim] f32 (the torch.randn_like noise,
    passed explicitly); params: raw (in, out) f32 weights / (1, out) biases.
    Returns (x_reconstructed [bf16], mu [f32], sigma [f32])."""
    B, input_dim = x.shape
    hidden = params["w1"].shape[1]
    z_dim = params["w_mu"].shape[1]
    assert z_dim <= HALF, "latent dim must fit in half a lane group"

    if block_b is None:
        block_b = _pick_block_b(B, num_tensorcores=num_tensorcores)
    n_blocks = pl.cdiv(B, block_b)
    B_pad = n_blocks * block_b

    packed = pack_params(params, z_dim, param_dtype)

    # Pad the batch up to a multiple of the tile size (x stays f32 in HBM;
    # the bf16 cast for the MXU happens inside the kernel).
    if B_pad != B:
        x = jnp.pad(x, ((0, B_pad - B), (0, 0)))
    # eps: bf16, HALF lanes (eps in [0, z_dim), zeros elsewhere) — the only
    # wrapper-side repack, ~B*HALF*2 bytes (<1% of kernel HBM traffic).
    eps_p = jnp.zeros((B_pad, HALF), param_dtype).at[:B, :z_dim].set(
        eps.astype(param_dtype))

    batch_spec = lambda d: pl.BlockSpec((block_b, d), lambda i: (i, 0))
    resident = lambda a: pl.BlockSpec(a.shape, lambda i: (0, 0))  # VMEM-resident

    flops = 2 * B_pad * (input_dim * hidden + hidden * 2 * HALF
                         + HALF * hidden + hidden * input_dim)
    bytes_accessed = (
        B_pad * input_dim * 4                              # x read (f32)
        + eps_p.size * eps_p.dtype.itemsize                # eps read (bf16)
        + sum(v.size * v.dtype.itemsize for v in packed.values())
        + B_pad * input_dim * eps_p.dtype.itemsize         # x_rec write (bf16)
        + B_pad * 2 * HALF * 4)                            # musig write (f32)

    xrec, musig = pl.pallas_call(
        functools.partial(vae_kernel, half=HALF),
        grid=(n_blocks,),
        in_specs=[batch_spec(input_dim), batch_spec(HALF),
                  resident(packed["w1"]), resident(packed["b1"]),
                  resident(packed["w_head"]), resident(packed["b_head"]),
                  resident(packed["w2"]), resident(packed["b2"]),
                  resident(packed["w3"]), resident(packed["b3"])],
        out_specs=(batch_spec(input_dim), batch_spec(2 * HALF)),
        out_shape=(jax.ShapeDtypeStruct((B_pad, input_dim), param_dtype),
                   jax.ShapeDtypeStruct((B_pad, 2 * HALF), jnp.float32)),
        compiler_params=pltpu.CompilerParams(
            dimension_semantics=("parallel",)),
        cost_estimate=pl.CostEstimate(
            flops=flops,
            transcendentals=B_pad * input_dim,   # one tanh per output pixel
            bytes_accessed=bytes_accessed),
    )(x, eps_p,
      packed["w1"], packed["b1"], packed["w_head"], packed["b_head"],
      packed["w2"], packed["b2"], packed["w3"], packed["b3"])

    x_rec = xrec[:B]                       # bf16 reconstruction
    mu = musig[:B, :z_dim]
    sigma = musig[:B, HALF:HALF + z_dim]
    return x_rec, mu, sigma


def init_params(key, input_dim, hidden_dim, z_dim):
    """PyTorch nn.Linear-style init (uniform +/- 1/sqrt(fan_in)).
    Weights stored pre-transposed as (in, out); biases as (1, out)."""
    def linear(k, fan_in, fan_out):
        kw, kb = jax.random.split(k)
        bound = 1.0 / jnp.sqrt(fan_in)
        w = jax.random.uniform(kw, (fan_in, fan_out), jnp.float32, -bound, bound)
        b = jax.random.uniform(kb, (1, fan_out), jnp.float32, -bound, bound)
        return w, b

    k1, k2, k3, k4, k5 = jax.random.split(key, 5)
    w1, b1 = linear(k1, input_dim, hidden_dim)        # img2hid
    w_mu, b_mu = linear(k2, hidden_dim, z_dim)        # hid2mu
    w_sig, b_sig = linear(k3, hidden_dim, z_dim)      # hid2sigma
    w2, b2 = linear(k4, z_dim, hidden_dim)            # z2hid
    w3, b3 = linear(k5, hidden_dim, input_dim)        # hid2img
    return dict(w1=w1, b1=b1, w_mu=w_mu, b_mu=b_mu,
                w_sigma=w_sig, b_sigma=b_sig, w2=w2, b2=b2, w3=w3, b3=b3)


def reference_forward(x, params, eps, param_dtype=jnp.bfloat16):
    """Pure-JAX reference on the ORIGINAL (unfused, unpadded) parameters,
    mirroring the kernel numerics: bf16 matmul inputs, f32 accumulation,
    f32 elementwise, standard sigmoid, f32 eps."""
    f32 = jnp.float32
    c = lambda a: a.astype(param_dtype)
    h = jnp.maximum(jnp.dot(c(x), c(params["w1"]), preferred_element_type=f32)
                    + params["b1"], 0.0)
    mu = jnp.dot(c(h), c(params["w_mu"]), preferred_element_type=f32) + params["b_mu"]
    sigma = jnp.dot(c(h), c(params["w_sigma"]), preferred_element_type=f32) + params["b_sigma"]
    z = mu + sigma * eps
    h2 = jnp.maximum(jnp.dot(c(z), c(params["w2"]), preferred_element_type=f32)
                     + params["b2"], 0.0)
    xr = jax.nn.sigmoid(jnp.dot(c(h2), c(params["w3"]), preferred_element_type=f32)
                        + params["b3"])
    return xr, mu, sigma


if __name__ == "__main__":
    # Small shapes consistent with the module (input_dim, hidden_dim, z_dim).
    B, INPUT_DIM, HIDDEN_DIM, Z_DIM = 8, 64, 32, 8

    key = jax.random.PRNGKey(0)
    k_params, k_x, k_eps = jax.random.split(key, 3)

    params = init_params(k_params, INPUT_DIM, HIDDEN_DIM, Z_DIM)
    x = jax.random.uniform(k_x, (B, INPUT_DIM), jnp.float32)   # pixels in [0,1)
    eps = jax.random.normal(k_eps, (B, Z_DIM), jnp.float32)    # torch.randn_like(sigma)

    x_rec, mu, sigma = vae_forward(x, params, eps)
    jax.block_until_ready((x_rec, mu, sigma))

    assert x_rec.shape == (B, INPUT_DIM) and x_rec.dtype == jnp.bfloat16
    assert mu.shape == (B, Z_DIM) and sigma.shape == (B, Z_DIM)

    xr_ref, mu_ref, sig_ref = reference_forward(x, params, eps)
    assert jnp.allclose(mu, mu_ref, atol=2e-2, rtol=2e-2), "mu mismatch"
    assert jnp.allclose(sigma, sig_ref, atol=2e-2, rtol=2e-2), "sigma mismatch"
    assert jnp.allclose(x_rec.astype(jnp.float32), xr_ref,
                        atol=2e-2, rtol=2e-2), "x_rec mismatch"

    print("KERNEL_OK")
</pallas_src>

<mosaic_0001>
module attributes {stable_mosaic.version = 11 : i64} {
  func.func @vae_kernel(%arg0: i32, %arg1: memref<8x64xf32, #tpu.memory_space<vmem>>, %arg2: memref<8x64xbf16, #tpu.memory_space<vmem>>, %arg3: memref<64x32xbf16, #tpu.memory_space<vmem>>, %arg4: memref<1x32xf32, #tpu.memory_space<vmem>>, %arg5: memref<32x128xbf16, #tpu.memory_space<vmem>>, %arg6: memref<1x128xf32, #tpu.memory_space<vmem>>, %arg7: memref<64x32xbf16, #tpu.memory_space<vmem>>, %arg8: memref<1x32xf32, #tpu.memory_space<vmem>>, %arg9: memref<32x64xbf16, #tpu.memory_space<vmem>>, %arg10: memref<1x64xf32, #tpu.memory_space<vmem>>, %arg11: memref<8x64xbf16, #tpu.memory_space<vmem>>, %arg12: memref<8x128xf32, #tpu.memory_space<vmem>>) attributes {dimension_semantics = [#tpu.dimension_semantics<parallel>], iteration_bounds = array<i64: 1>, scalar_prefetch = 0 : i64, scratch_operands = 0 : i64, tpu.core_type = #tpu.core_type<tc>, window_params = [{transform_indices = @transform_0, window_bounds = array<i64: 8, 64>}, {transform_indices = @transform_1, window_bounds = array<i64: 8, 64>}, {pipeline_mode = #tpu.pipeline_mode<synchronous>, transform_indices = @transform_2, window_bounds = array<i64: 64, 32>}, {pipeline_mode = #tpu.pipeline_mode<synchronous>, transform_indices = @transform_3, window_bounds = array<i64: 1, 32>}, {pipeline_mode = #tpu.pipeline_mode<synchronous>, transform_indices = @transform_4, window_bounds = array<i64: 32, 128>}, {pipeline_mode = #tpu.pipeline_mode<synchronous>, transform_indices = @transform_5, window_bounds = array<i64: 1, 128>}, {pipeline_mode = #tpu.pipeline_mode<synchronous>, transform_indices = @transform_6, window_bounds = array<i64: 64, 32>}, {pipeline_mode = #tpu.pipeline_mode<synchronous>, transform_indices = @transform_7, window_bounds = array<i64: 1, 32>}, {pipeline_mode = #tpu.pipeline_mode<synchronous>, transform_indices = @transform_8, window_bounds = array<i64: 32, 64>}, {pipeline_mode = #tpu.pipeline_mode<synchronous>, transform_indices = @transform_9, window_bounds = array<i64: 1, 64>}, {transform_indices = @transform_10, window_bounds = array<i64: 8, 64>}, {transform_indices = @transform_11, window_bounds = array<i64: 8, 128>}]} {
    %c0 = arith.constant 0 : index
    %c0_0 = arith.constant 0 : index
    %0 = vector.load %arg1[%c0, %c0_0] : memref<8x64xf32, #tpu.memory_space<vmem>>, vector<8x64xf32>
    %1 = arith.truncf %0 : vector<8x64xf32> to vector<8x64xbf16>
    %c0_1 = arith.constant 0 : index
    %c0_2 = arith.constant 0 : index
    %2 = vector.load %arg3[%c0_1, %c0_2] : memref<64x32xbf16, #tpu.memory_space<vmem>>, vector<64x32xbf16>
    %cst = arith.constant dense<0.000000e+00> : vector<8x32xf32>
    %3 = tpu.matmul %1, %2, %cst {dimension_numbers = #tpu.dot_dimension_numbers<[1], [0], [0], [1], [0, 0, 1, 1], [], []>} : vector<8x64xbf16>, vector<64x32xbf16>, vector<8x32xf32> -> vector<8x32xf32>
    %c0_3 = arith.constant 0 : index
    %c0_4 = arith.constant 0 : index
    %4 = vector.load %arg4[%c0_3, %c0_4] : memref<1x32xf32, #tpu.memory_space<vmem>>, vector<1x32xf32>
    %5 = vector.broadcast %4 : vector<1x32xf32> to vector<8x32xf32>
    %6 = arith.addf %3, %5 : vector<8x32xf32>
    %cst_5 = arith.constant 0.000000e+00 : f32
    %7 = vector.broadcast %cst_5 : f32 to vector<8x32xf32>
    %8 = arith.maximumf %6, %7 : vector<8x32xf32>
    %9 = arith.truncf %8 : vector<8x32xf32> to vector<8x32xbf16>
    %c0_6 = arith.constant 0 : index
    %c0_7 = arith.constant 0 : index
    %10 = vector.load %arg5[%c0_6, %c0_7] : memref<32x128xbf16, #tpu.memory_space<vmem>>, vector<32x128xbf16>
    %cst_8 = arith.constant dense<0.000000e+00> : vector<8x128xf32>
    %11 = tpu.matmul %9, %10, %cst_8 {dimension_numbers = #tpu.dot_dimension_numbers<[1], [0], [0], [1], [0, 0, 1, 1], [], []>} : vector<8x32xbf16>, vector<32x128xbf16>, vector<8x128xf32> -> vector<8x128xf32>
    %c0_9 = arith.constant 0 : index
    %c0_10 = arith.constant 0 : index
    %12 = vector.load %arg6[%c0_9, %c0_10] : memref<1x128xf32, #tpu.memory_space<vmem>>, vector<1x128xf32>
    %13 = vector.broadcast %12 : vector<1x128xf32> to vector<8x128xf32>
    %14 = arith.addf %11, %13 : vector<8x128xf32>
    %15 = vector.extract_strided_slice %14 {offsets = [0, 0], sizes = [8, 64], strides = [1, 1]} : vector<8x128xf32> to vector<8x64xf32>
    %16 = vector.extract_strided_slice %14 {offsets = [0, 64], sizes = [8, 64], strides = [1, 1]} : vector<8x128xf32> to vector<8x64xf32>
    %c0_11 = arith.constant 0 : index
    %c0_12 = arith.constant 0 : index
    %17 = vector.load %arg2[%c0_11, %c0_12] : memref<8x64xbf16, #tpu.memory_space<vmem>>, vector<8x64xbf16>
    %18 = arith.extf %17 : vector<8x64xbf16> to vector<8x64xf32>
    %19 = arith.mulf %16, %18 : vector<8x64xf32>
    %20 = arith.addf %15, %19 : vector<8x64xf32>
    %21 = arith.truncf %20 : vector<8x64xf32> to vector<8x64xbf16>
    %c0_13 = arith.constant 0 : index
    %c0_14 = arith.constant 0 : index
    %22 = vector.load %arg7[%c0_13, %c0_14] : memref<64x32xbf16, #tpu.memory_space<vmem>>, vector<64x32xbf16>
    %cst_15 = arith.constant dense<0.000000e+00> : vector<8x32xf32>
    %23 = tpu.matmul %21, %22, %cst_15 {dimension_numbers = #tpu.dot_dimension_numbers<[1], [0], [0], [1], [0, 0, 1, 1], [], []>} : vector<8x64xbf16>, vector<64x32xbf16>, vector<8x32xf32> -> vector<8x32xf32>
    %c0_16 = arith.constant 0 : index
    %c0_17 = arith.constant 0 : index
    %24 = vector.load %arg8[%c0_16, %c0_17] : memref<1x32xf32, #tpu.memory_space<vmem>>, vector<1x32xf32>
    %25 = vector.broadcast %24 : vector<1x32xf32> to vector<8x32xf32>
    %26 = arith.addf %23, %25 : vector<8x32xf32>
    %cst_18 = arith.constant 0.000000e+00 : f32
    %27 = vector.broadcast %cst_18 : f32 to vector<8x32xf32>
    %28 = arith.maximumf %26, %27 : vector<8x32xf32>
    %29 = arith.truncf %28 : vector<8x32xf32> to vector<8x32xbf16>
    %c0_19 = arith.constant 0 : index
    %c0_20 = arith.constant 0 : index
    %30 = vector.load %arg9[%c0_19, %c0_20] : memref<32x64xbf16, #tpu.memory_space<vmem>>, vector<32x64xbf16>
    %cst_21 = arith.constant dense<0.000000e+00> : vector<8x64xf32>
    %31 = tpu.matmul %29, %30, %cst_21 {dimension_numbers = #tpu.dot_dimension_numbers<[1], [0], [0], [1], [0, 0, 1, 1], [], []>} : vector<8x32xbf16>, vector<32x64xbf16>, vector<8x64xf32> -> vector<8x64xf32>
    %c0_22 = arith.constant 0 : index
    %c0_23 = arith.constant 0 : index
    %32 = vector.load %arg10[%c0_22, %c0_23] : memref<1x64xf32, #tpu.memory_space<vmem>>, vector<1x64xf32>
    %33 = vector.broadcast %32 : vector<1x64xf32> to vector<8x64xf32>
    %34 = arith.addf %31, %33 : vector<8x64xf32>
    %cst_24 = arith.constant 5.000000e-01 : f32
    %35 = vector.broadcast %cst_24 : f32 to vector<8x64xf32>
    %36 = arith.mulf %35, %34 : vector<8x64xf32>
    %37 = math.tanh %36 : vector<8x64xf32>
    %cst_25 = arith.constant 5.000000e-01 : f32
    %38 = vector.broadcast %cst_25 : f32 to vector<8x64xf32>
    %39 = arith.mulf %38, %37 : vector<8x64xf32>
    %cst_26 = arith.constant 5.000000e-01 : f32
    %40 = vector.broadcast %cst_26 : f32 to vector<8x64xf32>
    %41 = arith.addf %39, %40 : vector<8x64xf32>
    %42 = arith.truncf %41 : vector<8x64xf32> to vector<8x64xbf16>
    %c0_27 = arith.constant 0 : index
    %c0_28 = arith.constant 0 : index
    %43 = vector.load %arg11[%c0_27, %c0_28] : memref<8x64xbf16, #tpu.memory_space<vmem>>, vector<8x64xbf16>
    tpu.vector_store %arg11[%c0_27, %c0_28], %42 {strides = array<i32>} : memref<8x64xbf16, #tpu.memory_space<vmem>>, vector<8x64xbf16>,
    %c0_29 = arith.constant 0 : index
    %c0_30 = arith.constant 0 : index
    %44 = vector.load %arg12[%c0_29, %c0_30] : memref<8x128xf32, #tpu.memory_space<vmem>>, vector<8x128xf32>
    tpu.vector_store %arg12[%c0_29, %c0_30], %14 {strides = array<i32>} : memref<8x128xf32, #tpu.memory_space<vmem>>, vector<8x128xf32>,
    return
  }
  func.func @transform_0(%arg0: i32) -> (i32, i32) {
    %c0_i32 = arith.constant 0 : i32
    %c0_i32_0 = arith.constant 0 : i32
    return %arg0, %c0_i32 : i32, i32
  }
  func.func @transform_1(%arg0: i32) -> (i32, i32) {
    %c0_i32 = arith.constant 0 : i32
    %c0_i32_0 = arith.constant 0 : i32
    return %arg0, %c0_i32 : i32, i32
  }
  func.func @transform_2(%arg0: i32) -> (i32, i32) {
    %c0_i32 = arith.constant 0 : i32
    %c0_i32_0 = arith.constant 0 : i32
    %c0_i32_1 = arith.constant 0 : i32
    return %c0_i32, %c0_i32_0 : i32, i32
  }
  func.func @transform_3(%arg0: i32) -> (i32, i32) {
    %c0_i32 = arith.constant 0 : i32
    %c0_i32_0 = arith.constant 0 : i32
    %c0_i32_1 = arith.constant 0 : i32
    return %c0_i32, %c0_i32_0 : i32, i32
  }
  func.func @transform_4(%arg0: i32) -> (i32, i32) {
    %c0_i32 = arith.constant 0 : i32
    %c0_i32_0 = arith.constant 0 : i32
    %c0_i32_1 = arith.constant 0 : i32
    return %c0_i32, %c0_i32_0 : i32, i32
  }
  func.func @transform_5(%arg0: i32) -> (i32, i32) {
    %c0_i32 = arith.constant 0 : i32
    %c0_i32_0 = arith.constant 0 : i32
    %c0_i32_1 = arith.constant 0 : i32
    return %c0_i32, %c0_i32_0 : i32, i32
  }
  func.func @transform_6(%arg0: i32) -> (i32, i32) {
    %c0_i32 = arith.constant 0 : i32
    %c0_i32_0 = arith.constant 0 : i32
    %c0_i32_1 = arith.constant 0 : i32
    return %c0_i32, %c0_i32_0 : i32, i32
  }
  func.func @transform_7(%arg0: i32) -> (i32, i32) {
    %c0_i32 = arith.constant 0 : i32
    %c0_i32_0 = arith.constant 0 : i32
    %c0_i32_1 = arith.constant 0 : i32
    return %c0_i32, %c0_i32_0 : i32, i32
  }
  func.func @transform_8(%arg0: i32) -> (i32, i32) {
    %c0_i32 = arith.constant 0 : i32
    %c0_i32_0 = arith.constant 0 : i32
    %c0_i32_1 = arith.constant 0 : i32
    return %c0_i32, %c0_i32_0 : i32, i32
  }
  func.func @transform_9(%arg0: i32) -> (i32, i32) {
    %c0_i32 = arith.constant 0 : i32
    %c0_i32_0 = arith.constant 0 : i32
    %c0_i32_1 = arith.constant 0 : i32
    return %c0_i32, %c0_i32_0 : i32, i32
  }
  func.func @transform_10(%arg0: i32) -> (i32, i32) {
    %c0_i32 = arith.constant 0 : i32
    %c0_i32_0 = arith.constant 0 : i32
    return %arg0, %c0_i32 : i32, i32
  }
  func.func @transform_11(%arg0: i32) -> (i32, i32) {
    %c0_i32 = arith.constant 0 : i32
    %c0_i32_0 = arith.constant 0 : i32
    return %arg0, %c0_i32 : i32, i32
  }
}

</mosaic_0001>

<bundles_post_ra>
// kernel: tpu_custom_call.1
= control target key start
LH: loop header
LB: loop body
LE: loop exit
PB: predicated region body
PF: predicated region fallthrough
CT: control target
= control target key end

     0   :  { %17 = vsyncpa [#allocation3], 0  ;;  %s529_s0 = inlined_call_operand.vmem [shape: f32[8,64], index: 0, kind: input, shape index: {}]   ;;  %s530_s1 = inlined_call_operand.vmem [shape: bf16[8,64], index: 1, kind: input, shape index: {}]   ;;  %s531_s2 = inlined_call_operand.vmem [shape: bf16[64,32], index: 2, kind: input, shape index: {}]   ;;  %s532_s3 = inlined_call_operand.vmem [shape: f32[1,32], index: 3, kind: input, shape index: {}]   ;;  %s533_s4 = inlined_call_operand.vmem [shape: bf16[32,128], index: 4, kind: input, shape index: {}]   ;;  %s534_s5 = inlined_call_operand.vmem [shape: f32[1,128], index: 5, kind: input, shape index: {}]   ;;  %s535_s6 = inlined_call_operand.vmem [shape: bf16[64,32], index: 6, kind: input, shape index: {}]   ;;  %s536_s7 = inlined_call_operand.vmem [shape: f32[1,32], index: 7, kind: input, shape index: {}]   ;;  %s537_s8 = inlined_call_operand.vmem [shape: bf16[32,64], index: 8, kind: input, shape index: {}]   ;;  %s538_s9 = inlined_call_operand.vmem [shape: f32[1,64], index: 9, kind: input, shape index: {}]   ;;  %s539_s10 = inlined_call_operand.hbm [shape: bf16[8,64], index: 10, kind: output, shape index: {0}]   ;;  %s540_s11 = inlined_call_operand.hbm [shape: f32[8,128], index: 11, kind: output, shape index: {1}]  }
   0x1   :  { %v332_v0 = vld [vmem:[%s531_s2 + $0x18] sm:$0xff]  ;;  %v331_v1 = vld [vmem:[%s531_s2 + $0x10] sm:$0xff] }
   0x2   :  { %86 = vmatpush.bf16.msra.mxu0 %v332_v0 }
   0x3   :  { %18 = vsyncpa [#allocation5], 0  ;;  %v330_v2 = vld [vmem:[%s531_s2 + $0x8] sm:$0xff]  ;;  %v329_v3 = vld [vmem:[%s531_s2] sm:$0xff]  ;;  %vm78_vm0 = vcmask 523264   ;;  %vm117_vm1 = vcmask 261120  }
   0x4   :  { %v40_v4 = vld [vmem:[%s529_s0] sm:$0xff]  ;;  %v334_v6 = vld [vmem:[%s533_s4 + $0x8] sm:$0xff]  ;;  %s402_s0 = smov 64   ;;  %v338_v16 = vld [vmem:[%s535_s6 + $0x18] sm:$0xff]  ;;  %s263_s30 = sshll.u32 %s540_s11, 4  ;;  %vm242_vm2 = vcmask 519168   ;;  %s264_s30 = int_to_ptr.hbm [resolvable:$true] %s263_s30 }
   0x5   :  { %v41_v5 = vpack.c.bf16 %v40_v4, %v40_v4  ;;  %127 = vmatpush.bf16.msra.mxu1 %v334_v6  ;;  %v333_v7 = vld [vmem:[%s533_s4] sm:$0xff]  ;;  %190 = vmatpush.bf16.msra.mxu2 %v338_v16  ;;  %v337_v17 = vld [vmem:[%s535_s6 + $0x10] sm:$0xff]  ;;  %v336_v18 = vld [vmem:[%s535_s6 + $0x8] sm:$0xff]  ;;  %s252_s11 = sshll.u32 %s539_s10, 4  ;;  %s253_s11 = int_to_ptr.hbm [resolvable:$true] %s252_s11 }
   0x6   :  { %87 = vmatpush.bf16.msra.mxu0 %v331_v1  ;;  %v134_v8 = vld [vmem:[%s530_s1] sm:$0xf]  ;;  %v340_v29 = vld [vmem:[%s537_s8 + $0x8] sm:$0xff] }
   0x7   :  { %v135_v9 = vunpack.c.l.bf16 %v134_v8  ;;  %v344_v10 = vld [vmem:[%s532_s3] ss:$0 sm:$0xff]  ;;  %230 = vmatpush.bf16.msra.mxu3 %v340_v29 }
   0x8   :  { %v345_v19 = vld [vmem:[%s534_s5] ss:$0 sm:$0xff] }
   0x9   :  { %128 = vmatpush.bf16.msra.mxu1 %v333_v7  ;;  %137 = vrot.lane.b32.xlu0 %v135_v9, %s402_s0  ;;  %v335_v25 = vld [vmem:[%s535_s6] sm:$0xff]  ;;  %s403_s6 = smov [#allocation4]  }
   0xa   :  { %88 = vmatpush.bf16.msra.mxu0 %v330_v2  ;;  %191 = vmatpush.bf16.msra.mxu2 %v337_v17  ;;  %v339_v30 = vld [vmem:[%s537_s8] sm:$0xff]  ;;  %s261_s27 = sshll.u32 %s403_s6, 4  ;;  %s262_s27 = int_to_ptr.vmem [resolvable:$true] %s261_s27 }
   0xb   :  { %231 = vmatpush.bf16.msra.mxu3 %v339_v30  ;;  %v346_v31 = vld [vmem:[%s536_s7] ss:$0 sm:$0xff]  ;;  %s404_s7 = smov [#allocation2]  }
   0xc   :  { %v347_v37 = vld [vmem:[%s538_s9] ss:$0 sm:$0xff]  ;;  %s250_s12 = sshll.u32 %s404_s7, 4  ;;  %s251_s12 = int_to_ptr.vmem [resolvable:$true] %s250_s12 }
   0xe   :  { %89 = vmatpush.bf16.msra.mxu0 %v329_v3  ;;  %192 = vmatpush.bf16.msra.mxu2 %v336_v18 }
  0x11   :  { %293 = vmatmul.msk.bf16.vlgmr.msra.gmra.mxu0 %vm78_vm0, %v41_v5 }
  0x12   :  { %193 = vmatpush.bf16.msra.mxu2 %v335_v25 }
  0x7b   :  { %v138_v21 = vpop.permute.xlu0 %137 }
  0x8e   :  { %v91_v11 = vpop.f32.mrf.mxu0 }
  0x8f   :  { %v92_v12 = vadd.f32 %v344_v10, %v91_v11 }
  0x91   :  { %v95_v13 = vmax.f32 %v92_v12, 0.0 }
  0x93   :  { %v96_v14 = vpack.c.bf16 %v95_v13, %v95_v13 }
  0x95   :  { %302 = vmatmul.msk.bf16.vlgmr.msra.gmra.mxu1 %vm117_vm1, %v96_v14 }
  0x96   :  { %v93_v15 = vpop.f32.mrf.mxu0 }
 0x112   :  { %v130_v20 = vpop.f32.mrf.mxu1 }
 0x113   :  { %v131_v22 = vadd.f32 %v345_v19, %v130_v20 }
 0x115   :  { %244 = vst [vmem:[#allocation4] sm:$0xff] %v131_v22  ;;  %v140_v23 = vmul.f32 %v138_v21, %v131_v22 }
 0x116   :  { %266 = dma.vmem_to_hbm [thread:$0]  %s262_s27, 128, %s264_s30, [#allocation5]  }
 0x117   :  { %142 = vrot.lane.b32.xlu0 %v140_v23, %s402_s0 }
 0x11a   :  { %v132_v24 = vpop.f32.mrf.mxu1 }
 0x189   :  { %v143_v26 = vpop.permute.xlu0 %142 }
 0x18a   :  { %v145_v27 = vadd.f32 %v143_v26, %v131_v22 }
 0x18c   :  { %v146_v28 = vpack.c.bf16 %v145_v27, %v145_v27 }
 0x18e   :  { %319 = vmatmul.msk.bf16.vlgmr.msra.gmra.mxu2 %vm78_vm0, %v146_v28 }
 0x211   :  { %v195_v32 = vpop.f32.mrf.mxu2 }
 0x212   :  { %v196_v33 = vadd.f32 %v346_v31, %v195_v32 }
 0x214   :  { %v199_v34 = vmax.f32 %v196_v33, 0.0 }
 0x216   :  { %v200_v35 = vpack.c.bf16 %v199_v34, %v199_v34 }
 0x218   :  { %328 = vmatmul.msk.bf16.vlgmr.msra.gmra.mxu3 %vm117_vm1, %v200_v35 }
 0x219   :  { %v197_v36 = vpop.f32.mrf.mxu2 }
 0x29b   :  { %v233_v38 = vpop.f32.mrf.mxu3 }
 0x29c   :  { %v234_v39 = vadd.f32 %v347_v37, %v233_v38 }
 0x29e   :  { %v237_v40 = vmul.f32 0.5, %v234_v39 }
 0x2a0   :  { %348 = vtanh.f32 %v237_v40 }
 0x2a3   :  { %v235_v41 = vpop.f32.mrf.mxu3 }
 0x2a6   :  { %v349_v42 = vpop.eup %348 }
 0x2a7   :  { %v239_v43 = vmul.f32 0.5, %v349_v42 }
 0x2a9   :  { %v240_v44 = vadd.f32 0.5, %v239_v43 }
 0x2ab   :  { %v241_v45 = vpack.c.bf16 %v240_v44, %v240_v44 }
 0x2ad   :  { %243 = vst.msk [vmem:[#allocation2] sm:$0xf] %vm242_vm2, %v241_v45 }
 0x2ae   :  { %255 = dma.vmem_to_hbm [thread:$0]  %s251_s12, 64, %s253_s11, [#allocation3]  }
 0x2af   :  { %398 = dma.done.wait [#allocation3], 64  }
 0x2b0   :  { %399 = vsyncadd [#allocation3], 4294967232 }
 0x2b1   :  { %400 = dma.done.wait [#allocation5], 128  }
 0x2b2   :  { %401 = vsyncadd [#allocation5], 4294967168 }
 0x2b3   :  { %275 = vsyncpa [#allocation3], 1 }
 0x2b4   :  { %276 = vsyncpa [#allocation5], 1 }

</bundles_post_ra>
